<compile_context>
chip_gen: v5e
topology: v5e:2x2
jax: 0.10.0
libtpu: 0.0.40
codegen_flags: <defaults>
</compile_context>

<pallas_src>
import numpy as np
import jax
import jax.numpy as jnp
from jax.experimental import pallas as pl
from jax.experimental.pallas import tpu as pltpu

# ---------------- module hyper-parameters (consistent with the PyTorch opt) ---
BATCH = 2            # spec's tiny batch (the kernel itself handles any batch)
NUM_BOXES = 4        # opt.num_boxes
NUM_FRAMES = 8       # opt.num_frames  -> nr_frames = 4
NR_FRAMES = NUM_FRAMES // 2
COORD_DIM = 32       # opt.coord_feature_dim (must be even)
NUM_CLASSES = 10     # opt.num_classes
BN_EPS = 1e-5

VB = 8                                   # videos per grid step (16 on v6e/v7x)
TILE_ROWS = NR_FRAMES * VB * NUM_BOXES   # 128 rows per grid step, order (t,b,n)
GRP = VB * NUM_BOXES                     # 32 rows per frame block
OUT_LANES = 16                           # classifier output lanes (>= 10)


# --------------------- packed-parameter buffer layout (static) ----------------
def _r8(n):
    return ((n + 7) // 8) * 8

# packA: 128 lanes wide
R_MMIX = 0                                     # (128,128) cross-box mixing
R_AVG = R_MMIX + _r8(TILE_ROWS)                # (VB, GRP) mean-over-boxes
R_W1 = R_AVG + _r8(VB)                         # (4, 16)
R_W2 = R_W1 + _r8(4)                           # (16, 32)
R_W3A = R_W2 + _r8(COORD_DIM // 2)             # (32, 32)  W3[:D]  (folded)
R_W3B = R_W3A + _r8(COORD_DIM)                 # (32, 32)  W3[D:]  (folded)
R_W4 = R_W3B + _r8(COORD_DIM)                  # (32, 32)
R_W5 = R_W4 + _r8(COORD_DIM)                   # (128, 32) as 4x(32,32) blocks
R_W6 = R_W5 + _r8(NR_FRAMES * COORD_DIM)       # (32, 32)
R_W7 = R_W6 + _r8(COORD_DIM)                   # (32, 32)
R_SH = R_W7 + _r8(COORD_DIM)                   # 8 rows of shifts / biases
PACKA_ROWS = R_SH + 8                          # = 456  (~228 KiB)

# packB: 512 lanes wide
R_W8 = 0                                       # (32, 512)
R_B8 = R_W8 + COORD_DIM                        # (1, 512)
R_W9T = _r8(R_B8 + 1)                          # (16, 512)  w9^T zero-padded
PACKB_ROWS = _r8(R_W9T + OUT_LANES)            # = 56   (~112 KiB)


# ------------------------------- Pallas kernel --------------------------------
def _video_coord_kernel(x_ref, pa_ref, pb_ref, out_ref):
    f32 = jnp.float32
    D, Dh, T = COORD_DIM, COORD_DIM // 2, NR_FRAMES

    sh = pa_ref[R_SH:R_SH + 8, :]            # h1,h2,h3,h4,h5,h6,b7,b9 (padded)
    x = x_ref[...]                                                    # (128, 4)

    # ---- coord_to_feature (BN scales folded into bias-free weights) ----
    h = jnp.dot(x, pa_ref[R_W1:R_W1 + 4, :Dh], preferred_element_type=f32)
    h = jnp.maximum(h + sh[0:1, :Dh], 0.0)                            # (128, 16)
    bf = jnp.dot(h, pa_ref[R_W2:R_W2 + Dh, :D], preferred_element_type=f32)
    bf = jnp.maximum(bf + sh[1:2, :D], 0.0)                           # (128, 32)

    # ---- cross-box spatial message: block-diagonal mixing matmul ----
    msg = jnp.dot(pa_ref[R_MMIX:R_MMIX + TILE_ROWS, :TILE_ROWS], bf,
                  preferred_element_type=f32)                         # (128, 32)

    # ---- spatial_node_fusion: split W3, no concat staging ----
    h = (jnp.dot(bf, pa_ref[R_W3A:R_W3A + D, :D], preferred_element_type=f32)
         + jnp.dot(msg, pa_ref[R_W3B:R_W3B + D, :D], preferred_element_type=f32))
    h = jnp.maximum(h + sh[2:3, :D], 0.0)
    h = jnp.dot(h, pa_ref[R_W4:R_W4 + D, :D], preferred_element_type=f32)
    bf_sp = jnp.maximum(h + sh[3:4, :D], 0.0)                         # (128, 32)

    # ---- box_feature_fusion: split-K over frame blocks (no lane staging) ----
    h = jnp.dot(bf_sp[0:GRP, :], pa_ref[R_W5:R_W5 + D, :D],
                preferred_element_type=f32)
    for t in range(1, T):
        h = h + jnp.dot(bf_sp[t * GRP:(t + 1) * GRP, :],
                        pa_ref[R_W5 + t * D:R_W5 + (t + 1) * D, :D],
                        preferred_element_type=f32)                   # (32, 32)
    h = jnp.maximum(h + sh[4:5, :D], 0.0)
    h = jnp.dot(h, pa_ref[R_W6:R_W6 + D, :D], preferred_element_type=f32)
    boxf = jnp.maximum(h + sh[5:6, :D], 0.0)                          # (32, 32)

    # ---- mean over boxes ----
    vid = jnp.dot(pa_ref[R_AVG:R_AVG + VB, :GRP], boxf,
                  preferred_element_type=f32)                         # (8, 32)

    # ---- classifier ----
    h = jnp.maximum(jnp.dot(vid, pa_ref[R_W7:R_W7 + D, :D],
                            preferred_element_type=f32) + sh[6:7, :D], 0.0)
    h = jnp.maximum(jnp.dot(h, pb_ref[R_W8:R_W8 + D, :],
                            preferred_element_type=f32)
                    + pb_ref[R_B8:R_B8 + 1, :], 0.0)                  # (8, 512)
    # final layer: w9 stored transposed (OUT_LANES, 512); contract the 512 axes
    logits = jax.lax.dot_general(
        h, pb_ref[R_W9T:R_W9T + OUT_LANES, :],
        dimension_numbers=(((1,), (1,)), ((), ())),
        preferred_element_type=f32)                                   # (8, 16)
    out_ref[...] = logits + sh[7:8, :OUT_LANES]


# ------------------------------- wrapper ---------------------------------------
def video_model_coord_forward(packA, packB, global_img_input, box_categories,
                              box_input, video_label):
    """box_input: (b, nr_frames, nr_boxes, 4) — same as the PyTorch module."""
    del global_img_input, box_categories, video_label   # unused by forward
    b = box_input.shape[0]
    nt = (b + VB - 1) // VB                    # grid steps (video tiles)
    bp = nt * VB
    x = box_input.astype(jnp.float32)
    if bp != b:                                # pad to a whole tile of videos
        x = jnp.pad(x, ((0, bp - b), (0, 0), (0, 0), (0, 0)))
    # per-tile row order (frame, video-in-tile, box)
    x = x.reshape(nt, VB, NR_FRAMES, NUM_BOXES, 4)
    x = jnp.transpose(x, (0, 2, 1, 3, 4)).reshape(nt * TILE_ROWS, 4)

    out = pl.pallas_call(
        _video_coord_kernel,
        out_shape=jax.ShapeDtypeStruct((bp, OUT_LANES), jnp.float32),
        grid=(nt,),
        in_specs=[
            pl.BlockSpec((TILE_ROWS, 4), lambda i: (i, 0)),
            pl.BlockSpec((PACKA_ROWS, 128), lambda i: (0, 0)),   # VMEM-resident
            pl.BlockSpec((PACKB_ROWS, 512), lambda i: (0, 0)),   # VMEM-resident
        ],
        out_specs=pl.BlockSpec((VB, OUT_LANES), lambda i: (i, 0)),
        compiler_params=pltpu.CompilerParams(
            dimension_semantics=("parallel",)),
    )(x, packA, packB)
    return out[:b, :NUM_CLASSES]


# --------------------- one-time host-side parameter packing --------------------
def pack_params(params):
    D, Dh, T, N = COORD_DIM, COORD_DIM // 2, NR_FRAMES, NUM_BOXES
    A = np.zeros((PACKA_ROWS, 128), np.float32)

    # cross-box mixing: block-diag with 4x4 blocks, rows r = (t*VB + b)*N + n
    mmix = np.zeros((TILE_ROWS, TILE_ROWS), np.float32)
    for g in range(T * VB):
        base = g * N
        for n in range(N):
            for n2 in range(N):
                if n2 != n:
                    mmix[base + n, base + n2] = 1.0 / (N - 1)
    A[R_MMIX:R_MMIX + TILE_ROWS, :TILE_ROWS] = mmix

    # mean over boxes (per local video)
    for b in range(VB):
        A[R_AVG + b, b * N:(b + 1) * N] = 1.0 / N

    def fold(w, s):  # fold eval-mode BN scale into bias-free linear weight
        return np.asarray(w) * np.asarray(s).reshape(1, -1)

    A[R_W1:R_W1 + 4, :Dh] = fold(params["w1"], params["s1"])
    A[R_W2:R_W2 + Dh, :D] = fold(params["w2"], params["s2"])
    w3f = fold(params["w3"], params["s3"])                 # (2D, D)
    A[R_W3A:R_W3A + D, :D] = w3f[:D]
    A[R_W3B:R_W3B + D, :D] = w3f[D:]
    A[R_W4:R_W4 + D, :D] = fold(params["w4"], params["s4"])
    A[R_W5:R_W5 + T * D, :D] = fold(params["w5"], params["s5"])
    A[R_W6:R_W6 + D, :D] = fold(params["w6"], params["s6"])
    A[R_W7:R_W7 + D, :D] = np.asarray(params["w7"])

    A[R_SH + 0, :Dh] = np.asarray(params["h1"]).reshape(-1)
    A[R_SH + 1, :D] = np.asarray(params["h2"]).reshape(-1)
    A[R_SH + 2, :D] = np.asarray(params["h3"]).reshape(-1)
    A[R_SH + 3, :D] = np.asarray(params["h4"]).reshape(-1)
    A[R_SH + 4, :D] = np.asarray(params["h5"]).reshape(-1)
    A[R_SH + 5, :D] = np.asarray(params["h6"]).reshape(-1)
    A[R_SH + 6, :D] = np.asarray(params["b7"]).reshape(-1)
    A[R_SH + 7, :NUM_CLASSES] = np.asarray(params["b9"]).reshape(-1)

    Bm = np.zeros((PACKB_ROWS, 512), np.float32)
    Bm[R_W8:R_W8 + D, :] = np.asarray(params["w8"])
    Bm[R_B8, :] = np.asarray(params["b8"]).reshape(-1)
    Bm[R_W9T:R_W9T + NUM_CLASSES, :] = np.asarray(params["w9"]).T   # (10, 512)
    return jnp.asarray(A), jnp.asarray(Bm)


# ---------------------------- parameter construction ---------------------------
def _folded_bn(key, dim):
    k1, k2, k3, k4 = jax.random.split(key, 4)
    gamma = 1.0 + 0.05 * jax.random.normal(k1, (dim,), jnp.float32)
    beta = 0.05 * jax.random.normal(k2, (dim,), jnp.float32)
    mean = 0.05 * jax.random.normal(k3, (dim,), jnp.float32)
    var = 1.0 + 0.1 * jnp.abs(jax.random.normal(k4, (dim,), jnp.float32))
    scale = gamma / jnp.sqrt(var + BN_EPS)
    shift = beta - mean * scale
    return scale.reshape(1, dim), shift.reshape(1, dim)


def make_params(key):
    D = COORD_DIM
    Dh = D // 2
    TD = NR_FRAMES * D
    ks = jax.random.split(key, 20)

    def lin(k, fan_in, fan_out):
        lim = 1.0 / np.sqrt(fan_in)
        return jax.random.uniform(k, (fan_in, fan_out), jnp.float32, -lim, lim)

    p = {}
    # coord_to_feature
    p["w1"] = lin(ks[0], 4, Dh);    p["s1"], p["h1"] = _folded_bn(ks[1], Dh)
    p["w2"] = lin(ks[2], Dh, D);    p["s2"], p["h2"] = _folded_bn(ks[3], D)
    # spatial_node_fusion
    p["w3"] = lin(ks[4], 2 * D, D); p["s3"], p["h3"] = _folded_bn(ks[5], D)
    p["w4"] = lin(ks[6], D, D);     p["s4"], p["h4"] = _folded_bn(ks[7], D)
    # box_feature_fusion
    p["w5"] = lin(ks[8], TD, D);    p["s5"], p["h5"] = _folded_bn(ks[9], D)
    p["w6"] = lin(ks[10], D, D);    p["s6"], p["h6"] = _folded_bn(ks[11], D)
    # classifier (with biases)
    p["w7"] = lin(ks[12], D, D)
    p["b7"] = (0.05 * jax.random.normal(ks[13], (D,), jnp.float32)).reshape(1, D)
    p["w8"] = lin(ks[14], D, 512)
    p["b8"] = (0.05 * jax.random.normal(ks[15], (512,), jnp.float32)).reshape(1, 512)
    p["w9"] = lin(ks[16], 512, NUM_CLASSES)
    p["b9"] = (0.05 * jax.random.normal(ks[17], (NUM_CLASSES,),
                                        jnp.float32)).reshape(1, NUM_CLASSES)
    return p


# ------------------------------ pure-JAX reference ------------------------------
def reference_forward(params, box_input):
    """Mirrors the PyTorch forward (eval-mode BN as scale/shift, unfolded)."""
    b = box_input.shape[0]
    N, T, D = NUM_BOXES, NR_FRAMES, COORD_DIM
    x = jnp.transpose(box_input, (0, 2, 1, 3)).reshape(b * N * T, 4)
    h = jnp.maximum(x @ params["w1"] * params["s1"] + params["h1"], 0.0)
    bf = jnp.maximum(h @ params["w2"] * params["s2"] + params["h2"], 0.0)
    bf4 = bf.reshape(b, N, T, D)
    msg = (jnp.sum(bf4, axis=1, keepdims=True) - bf4) / (N - 1)
    cat = jnp.concatenate([bf4, msg], axis=3).reshape(b * N * T, 2 * D)
    h = jnp.maximum(cat @ params["w3"] * params["s3"] + params["h3"], 0.0)
    bf_sp = jnp.maximum(h @ params["w4"] * params["s4"] + params["h4"], 0.0)
    tmp = bf_sp.reshape(b * N, T * D)
    h = jnp.maximum(tmp @ params["w5"] * params["s5"] + params["h5"], 0.0)
    boxf = jnp.maximum(h @ params["w6"] * params["s6"] + params["h6"], 0.0)
    vid = jnp.mean(boxf.reshape(b, N, D), axis=1)
    h = jnp.maximum(vid @ params["w7"] + params["b7"], 0.0)
    h = jnp.maximum(h @ params["w8"] + params["b8"], 0.0)
    return h @ params["w9"] + params["b9"]


# ----------------------------------- main ---------------------------------------
if __name__ == "__main__":
    key = jax.random.PRNGKey(0)
    k_param, k_box, k_box2, k_img, k_cat = jax.random.split(key, 5)

    params = make_params(k_param)
    packA, packB = pack_params(params)            # host-side, once

    forward = jax.jit(video_model_coord_forward)

    # ---- spec-sized call (batch = 2, padded to one grid tile) ----
    box_input = jax.random.uniform(
        k_box, (BATCH, NR_FRAMES, NUM_BOXES, 4), jnp.float32)
    global_img_input = jax.random.normal(
        k_img, (BATCH, 3, NR_FRAMES, 16, 16), jnp.float32)
    box_categories = jax.random.randint(
        k_cat, (BATCH, NR_FRAMES, NUM_BOXES), 0, 5)
    video_label = jnp.zeros((BATCH,), jnp.int32)

    out = jax.block_until_ready(
        forward(packA, packB, global_img_input, box_categories,
                box_input, video_label))
    ref = reference_forward(params, box_input)
    assert out.shape == (BATCH, NUM_CLASSES)
    np.testing.assert_allclose(np.asarray(out), np.asarray(ref),
                               rtol=2e-4, atol=2e-4)

    # ---- batched call exercising the parallel grid (2 tiles x 8 videos) ----
    BIG = 2 * VB
    box_input_big = jax.random.uniform(
        k_box2, (BIG, NR_FRAMES, NUM_BOXES, 4), jnp.float32)
    out_big = jax.block_until_ready(
        forward(packA, packB,
                jnp.zeros((BIG, 3, NR_FRAMES, 16, 16), jnp.float32),
                jnp.zeros((BIG, NR_FRAMES, NUM_BOXES), jnp.int32),
                box_input_big,
                jnp.zeros((BIG,), jnp.int32)))
    ref_big = reference_forward(params, box_input_big)
    np.testing.assert_allclose(np.asarray(out_big), np.asarray(ref_big),
                               rtol=2e-4, atol=2e-4)

    print("KERNEL_OK")
</pallas_src>

<mosaic_0001>
module attributes {stable_mosaic.version = 11 : i64} {
  func.func @_video_coord_kernel(%arg0: i32, %arg1: memref<128x4xf32, #tpu.memory_space<vmem>>, %arg2: memref<456x128xf32, #tpu.memory_space<vmem>>, %arg3: memref<56x512xf32, #tpu.memory_space<vmem>>, %arg4: memref<8x16xf32, #tpu.memory_space<vmem>>) attributes {dimension_semantics = [#tpu.dimension_semantics<parallel>], iteration_bounds = array<i64: 1>, scalar_prefetch = 0 : i64, scratch_operands = 0 : i64, tpu.core_type = #tpu.core_type<tc>, window_params = [{transform_indices = @transform_0, window_bounds = array<i64: 128, 4>}, {pipeline_mode = #tpu.pipeline_mode<synchronous>, transform_indices = @transform_1, window_bounds = array<i64: 456, 128>}, {pipeline_mode = #tpu.pipeline_mode<synchronous>, transform_indices = @transform_2, window_bounds = array<i64: 56, 512>}, {transform_indices = @transform_3, window_bounds = array<i64: 8, 16>}]} {
    %c448 = arith.constant 448 : index
    %c0 = arith.constant 0 : index
    %0 = vector.load %arg2[%c448, %c0] : memref<456x128xf32, #tpu.memory_space<vmem>>, vector<8x128xf32>
    %c0_0 = arith.constant 0 : index
    %c0_1 = arith.constant 0 : index
    %1 = vector.load %arg1[%c0_0, %c0_1] : memref<128x4xf32, #tpu.memory_space<vmem>>, vector<128x4xf32>
    %c136 = arith.constant 136 : index
    %c0_2 = arith.constant 0 : index
    %2 = vector.load %arg2[%c136, %c0_2] : memref<456x128xf32, #tpu.memory_space<vmem>>, vector<4x16xf32>
    %cst = arith.constant dense<0.000000e+00> : vector<128x16xf32>
    %3 = tpu.matmul %1, %2, %cst {dimension_numbers = #tpu.dot_dimension_numbers<[1], [0], [0], [1], [0, 0, 1, 1], [], []>} : vector<128x4xf32>, vector<4x16xf32>, vector<128x16xf32> -> vector<128x16xf32>
    %4 = vector.extract_strided_slice %0 {offsets = [0, 0], sizes = [1, 16], strides = [1, 1]} : vector<8x128xf32> to vector<1x16xf32>
    %5 = vector.broadcast %4 : vector<1x16xf32> to vector<128x16xf32>
    %6 = arith.addf %3, %5 : vector<128x16xf32>
    %cst_3 = arith.constant 0.000000e+00 : f32
    %7 = vector.broadcast %cst_3 : f32 to vector<128x16xf32>
    %8 = arith.maximumf %6, %7 : vector<128x16xf32>
    %c144 = arith.constant 144 : index
    %c0_4 = arith.constant 0 : index
    %9 = vector.load %arg2[%c144, %c0_4] : memref<456x128xf32, #tpu.memory_space<vmem>>, vector<16x32xf32>
    %cst_5 = arith.constant dense<0.000000e+00> : vector<128x32xf32>
    %10 = tpu.matmul %8, %9, %cst_5 {dimension_numbers = #tpu.dot_dimension_numbers<[1], [0], [0], [1], [0, 0, 1, 1], [], []>} : vector<128x16xf32>, vector<16x32xf32>, vector<128x32xf32> -> vector<128x32xf32>
    %11 = vector.extract_strided_slice %0 {offsets = [1, 0], sizes = [1, 32], strides = [1, 1]} : vector<8x128xf32> to vector<1x32xf32>
    %12 = vector.broadcast %11 : vector<1x32xf32> to vector<128x32xf32>
    %13 = arith.addf %10, %12 : vector<128x32xf32>
    %cst_6 = arith.constant 0.000000e+00 : f32
    %14 = vector.broadcast %cst_6 : f32 to vector<128x32xf32>
    %15 = arith.maximumf %13, %14 : vector<128x32xf32>
    %c0_7 = arith.constant 0 : index
    %c0_8 = arith.constant 0 : index
    %16 = vector.load %arg2[%c0_7, %c0_8] : memref<456x128xf32, #tpu.memory_space<vmem>>, vector<128x128xf32>
    %cst_9 = arith.constant dense<0.000000e+00> : vector<128x32xf32>
    %17 = tpu.matmul %16, %15, %cst_9 {dimension_numbers = #tpu.dot_dimension_numbers<[1], [0], [0], [1], [0, 0, 1, 1], [], []>} : vector<128x128xf32>, vector<128x32xf32>, vector<128x32xf32> -> vector<128x32xf32>
    %c160 = arith.constant 160 : index
    %c0_10 = arith.constant 0 : index
    %18 = vector.load %arg2[%c160, %c0_10] : memref<456x128xf32, #tpu.memory_space<vmem>>, vector<32x32xf32>
    %cst_11 = arith.constant dense<0.000000e+00> : vector<128x32xf32>
    %19 = tpu.matmul %15, %18, %cst_11 {dimension_numbers = #tpu.dot_dimension_numbers<[1], [0], [0], [1], [0, 0, 1, 1], [], []>} : vector<128x32xf32>, vector<32x32xf32>, vector<128x32xf32> -> vector<128x32xf32>
    %c192 = arith.constant 192 : index
    %c0_12 = arith.constant 0 : index
    %20 = vector.load %arg2[%c192, %c0_12] : memref<456x128xf32, #tpu.memory_space<vmem>>, vector<32x32xf32>
    %cst_13 = arith.constant dense<0.000000e+00> : vector<128x32xf32>
    %21 = tpu.matmul %17, %20, %cst_13 {dimension_numbers = #tpu.dot_dimension_numbers<[1], [0], [0], [1], [0, 0, 1, 1], [], []>} : vector<128x32xf32>, vector<32x32xf32>, vector<128x32xf32> -> vector<128x32xf32>
    %22 = arith.addf %19, %21 : vector<128x32xf32>
    %23 = vector.extract_strided_slice %0 {offsets = [2, 0], sizes = [1, 32], strides = [1, 1]} : vector<8x128xf32> to vector<1x32xf32>
    %24 = vector.broadcast %23 : vector<1x32xf32> to vector<128x32xf32>
    %25 = arith.addf %22, %24 : vector<128x32xf32>
    %cst_14 = arith.constant 0.000000e+00 : f32
    %26 = vector.broadcast %cst_14 : f32 to vector<128x32xf32>
    %27 = arith.maximumf %25, %26 : vector<128x32xf32>
    %c224 = arith.constant 224 : index
    %c0_15 = arith.constant 0 : index
    %28 = vector.load %arg2[%c224, %c0_15] : memref<456x128xf32, #tpu.memory_space<vmem>>, vector<32x32xf32>
    %cst_16 = arith.constant dense<0.000000e+00> : vector<128x32xf32>
    %29 = tpu.matmul %27, %28, %cst_16 {dimension_numbers = #tpu.dot_dimension_numbers<[1], [0], [0], [1], [0, 0, 1, 1], [], []>} : vector<128x32xf32>, vector<32x32xf32>, vector<128x32xf32> -> vector<128x32xf32>
    %30 = vector.extract_strided_slice %0 {offsets = [3, 0], sizes = [1, 32], strides = [1, 1]} : vector<8x128xf32> to vector<1x32xf32>
    %31 = vector.broadcast %30 : vector<1x32xf32> to vector<128x32xf32>
    %32 = arith.addf %29, %31 : vector<128x32xf32>
    %cst_17 = arith.constant 0.000000e+00 : f32
    %33 = vector.broadcast %cst_17 : f32 to vector<128x32xf32>
    %34 = arith.maximumf %32, %33 : vector<128x32xf32>
    %35 = vector.extract_strided_slice %34 {offsets = [0, 0], sizes = [32, 32], strides = [1, 1]} : vector<128x32xf32> to vector<32x32xf32>
    %c256 = arith.constant 256 : index
    %c0_18 = arith.constant 0 : index
    %36 = vector.load %arg2[%c256, %c0_18] : memref<456x128xf32, #tpu.memory_space<vmem>>, vector<32x32xf32>
    %cst_19 = arith.constant dense<0.000000e+00> : vector<32x32xf32>
    %37 = tpu.matmul %35, %36, %cst_19 {dimension_numbers = #tpu.dot_dimension_numbers<[1], [0], [0], [1], [0, 0, 1, 1], [], []>} : vector<32x32xf32>, vector<32x32xf32>, vector<32x32xf32> -> vector<32x32xf32>
    %38 = vector.extract_strided_slice %34 {offsets = [32, 0], sizes = [32, 32], strides = [1, 1]} : vector<128x32xf32> to vector<32x32xf32>
    %c288 = arith.constant 288 : index
    %c0_20 = arith.constant 0 : index
    %39 = vector.load %arg2[%c288, %c0_20] : memref<456x128xf32, #tpu.memory_space<vmem>>, vector<32x32xf32>
    %cst_21 = arith.constant dense<0.000000e+00> : vector<32x32xf32>
    %40 = tpu.matmul %38, %39, %cst_21 {dimension_numbers = #tpu.dot_dimension_numbers<[1], [0], [0], [1], [0, 0, 1, 1], [], []>} : vector<32x32xf32>, vector<32x32xf32>, vector<32x32xf32> -> vector<32x32xf32>
    %41 = arith.addf %37, %40 : vector<32x32xf32>
    %42 = vector.extract_strided_slice %34 {offsets = [64, 0], sizes = [32, 32], strides = [1, 1]} : vector<128x32xf32> to vector<32x32xf32>
    %c320 = arith.constant 320 : index
    %c0_22 = arith.constant 0 : index
    %43 = vector.load %arg2[%c320, %c0_22] : memref<456x128xf32, #tpu.memory_space<vmem>>, vector<32x32xf32>
    %cst_23 = arith.constant dense<0.000000e+00> : vector<32x32xf32>
    %44 = tpu.matmul %42, %43, %cst_23 {dimension_numbers = #tpu.dot_dimension_numbers<[1], [0], [0], [1], [0, 0, 1, 1], [], []>} : vector<32x32xf32>, vector<32x32xf32>, vector<32x32xf32> -> vector<32x32xf32>
    %45 = arith.addf %41, %44 : vector<32x32xf32>
    %46 = vector.extract_strided_slice %34 {offsets = [96, 0], sizes = [32, 32], strides = [1, 1]} : vector<128x32xf32> to vector<32x32xf32>
    %c352 = arith.constant 352 : index
    %c0_24 = arith.constant 0 : index
    %47 = vector.load %arg2[%c352, %c0_24] : memref<456x128xf32, #tpu.memory_space<vmem>>, vector<32x32xf32>
    %cst_25 = arith.constant dense<0.000000e+00> : vector<32x32xf32>
    %48 = tpu.matmul %46, %47, %cst_25 {dimension_numbers = #tpu.dot_dimension_numbers<[1], [0], [0], [1], [0, 0, 1, 1], [], []>} : vector<32x32xf32>, vector<32x32xf32>, vector<32x32xf32> -> vector<32x32xf32>
    %49 = arith.addf %45, %48 : vector<32x32xf32>
    %50 = vector.extract_strided_slice %0 {offsets = [4, 0], sizes = [1, 32], strides = [1, 1]} : vector<8x128xf32> to vector<1x32xf32>
    %51 = vector.broadcast %50 : vector<1x32xf32> to vector<32x32xf32>
    %52 = arith.addf %49, %51 : vector<32x32xf32>
    %cst_26 = arith.constant 0.000000e+00 : f32
    %53 = vector.broadcast %cst_26 : f32 to vector<32x32xf32>
    %54 = arith.maximumf %52, %53 : vector<32x32xf32>
    %c384 = arith.constant 384 : index
    %c0_27 = arith.constant 0 : index
    %55 = vector.load %arg2[%c384, %c0_27] : memref<456x128xf32, #tpu.memory_space<vmem>>, vector<32x32xf32>
    %cst_28 = arith.constant dense<0.000000e+00> : vector<32x32xf32>
    %56 = tpu.matmul %54, %55, %cst_28 {dimension_numbers = #tpu.dot_dimension_numbers<[1], [0], [0], [1], [0, 0, 1, 1], [], []>} : vector<32x32xf32>, vector<32x32xf32>, vector<32x32xf32> -> vector<32x32xf32>
    %57 = vector.extract_strided_slice %0 {offsets = [5, 0], sizes = [1, 32], strides = [1, 1]} : vector<8x128xf32> to vector<1x32xf32>
    %58 = vector.broadcast %57 : vector<1x32xf32> to vector<32x32xf32>
    %59 = arith.addf %56, %58 : vector<32x32xf32>
    %cst_29 = arith.constant 0.000000e+00 : f32
    %60 = vector.broadcast %cst_29 : f32 to vector<32x32xf32>
    %61 = arith.maximumf %59, %60 : vector<32x32xf32>
    %c128 = arith.constant 128 : index
    %c0_30 = arith.constant 0 : index
    %62 = vector.load %arg2[%c128, %c0_30] : memref<456x128xf32, #tpu.memory_space<vmem>>, vector<8x32xf32>
    %cst_31 = arith.constant dense<0.000000e+00> : vector<8x32xf32>
    %63 = tpu.matmul %62, %61, %cst_31 {dimension_numbers = #tpu.dot_dimension_numbers<[1], [0], [0], [1], [0, 0, 1, 1], [], []>} : vector<8x32xf32>, vector<32x32xf32>, vector<8x32xf32> -> vector<8x32xf32>
    %c416 = arith.constant 416 : index
    %c0_32 = arith.constant 0 : index
    %64 = vector.load %arg2[%c416, %c0_32] : memref<456x128xf32, #tpu.memory_space<vmem>>, vector<32x32xf32>
    %cst_33 = arith.constant dense<0.000000e+00> : vector<8x32xf32>
    %65 = tpu.matmul %63, %64, %cst_33 {dimension_numbers = #tpu.dot_dimension_numbers<[1], [0], [0], [1], [0, 0, 1, 1], [], []>} : vector<8x32xf32>, vector<32x32xf32>, vector<8x32xf32> -> vector<8x32xf32>
    %66 = vector.extract_strided_slice %0 {offsets = [6, 0], sizes = [1, 32], strides = [1, 1]} : vector<8x128xf32> to vector<1x32xf32>
    %67 = vector.broadcast %66 : vector<1x32xf32> to vector<8x32xf32>
    %68 = arith.addf %65, %67 : vector<8x32xf32>
    %cst_34 = arith.constant 0.000000e+00 : f32
    %69 = vector.broadcast %cst_34 : f32 to vector<8x32xf32>
    %70 = arith.maximumf %68, %69 : vector<8x32xf32>
    %c0_35 = arith.constant 0 : index
    %c0_36 = arith.constant 0 : index
    %71 = vector.load %arg3[%c0_35, %c0_36] : memref<56x512xf32, #tpu.memory_space<vmem>>, vector<32x512xf32>
    %cst_37 = arith.constant dense<0.000000e+00> : vector<8x512xf32>
    %72 = tpu.matmul %70, %71, %cst_37 {dimension_numbers = #tpu.dot_dimension_numbers<[1], [0], [0], [1], [0, 0, 1, 1], [], []>} : vector<8x32xf32>, vector<32x512xf32>, vector<8x512xf32> -> vector<8x512xf32>
    %c32 = arith.constant 32 : index
    %c0_38 = arith.constant 0 : index
    %73 = vector.load %arg3[%c32, %c0_38] : memref<56x512xf32, #tpu.memory_space<vmem>>, vector<1x512xf32>
    %74 = vector.broadcast %73 : vector<1x512xf32> to vector<8x512xf32>
    %75 = arith.addf %72, %74 : vector<8x512xf32>
    %cst_39 = arith.constant 0.000000e+00 : f32
    %76 = vector.broadcast %cst_39 : f32 to vector<8x512xf32>
    %77 = arith.maximumf %75, %76 : vector<8x512xf32>
    %c40 = arith.constant 40 : index
    %c0_40 = arith.constant 0 : index
    %78 = vector.load %arg3[%c40, %c0_40] : memref<56x512xf32, #tpu.memory_space<vmem>>, vector<16x512xf32>
    %cst_41 = arith.constant dense<0.000000e+00> : vector<8x16xf32>
    %79 = tpu.matmul %77, %78, %cst_41 {dimension_numbers = #tpu.dot_dimension_numbers<[1], [1], [0], [0], [0, 0, 1, 0], [], []>} : vector<8x512xf32>, vector<16x512xf32>, vector<8x16xf32> -> vector<8x16xf32>
    %80 = vector.extract_strided_slice %0 {offsets = [7, 0], sizes = [1, 16], strides = [1, 1]} : vector<8x128xf32> to vector<1x16xf32>
    %81 = vector.broadcast %80 : vector<1x16xf32> to vector<8x16xf32>
    %82 = arith.addf %79, %81 : vector<8x16xf32>
    %c0_42 = arith.constant 0 : index
    %c0_43 = arith.constant 0 : index
    %83 = vector.load %arg4[%c0_42, %c0_43] : memref<8x16xf32, #tpu.memory_space<vmem>>, vector<8x16xf32>
    tpu.vector_store %arg4[%c0_42, %c0_43], %82 {strides = array<i32>} : memref<8x16xf32, #tpu.memory_space<vmem>>, vector<8x16xf32>,
    return
  }
  func.func @transform_0(%arg0: i32) -> (i32, i32) {
    %c0_i32 = arith.constant 0 : i32
    %c0_i32_0 = arith.constant 0 : i32
    return %arg0, %c0_i32 : i32, i32
  }
  func.func @transform_1(%arg0: i32) -> (i32, i32) {
    %c0_i32 = arith.constant 0 : i32
    %c0_i32_0 = arith.constant 0 : i32
    %c0_i32_1 = arith.constant 0 : i32
    return %c0_i32, %c0_i32_0 : i32, i32
  }
  func.func @transform_2(%arg0: i32) -> (i32, i32) {
    %c0_i32 = arith.constant 0 : i32
    %c0_i32_0 = arith.constant 0 : i32
    %c0_i32_1 = arith.constant 0 : i32
    return %c0_i32, %c0_i32_0 : i32, i32
  }
  func.func @transform_3(%arg0: i32) -> (i32, i32) {
    %c0_i32 = arith.constant 0 : i32
    %c0_i32_0 = arith.constant 0 : i32
    return %arg0, %c0_i32 : i32, i32
  }
}

</mosaic_0001>

<bundles_post_ra>
// kernel: video_model_coord_forward.1
= control target key start
LH: loop header
LB: loop body
LE: loop exit
PB: predicated region body
PF: predicated region fallthrough
CT: control target
= control target key end

     0   :  { %8 = vsyncpa [#allocation3], 0  ;;  %s1446_s15 = smov [#allocation2]   ;;  %s1447_s17 = smov 128   ;;  %s1809_s0 = inlined_call_operand.vmem [shape: f32[128,4], index: 0, kind: input, shape index: {}]   ;;  %s1810_s1 = inlined_call_operand.hbm [shape: f32[456,128], index: 1, kind: input, shape index: {}]   ;;  %s1811_s2 = inlined_call_operand.vmem [shape: f32[56,512], index: 2, kind: input, shape index: {}]   ;;  %s1812_s3 = inlined_call_operand.vmem [shape: f32[8,16], index: 3, kind: output, shape index: {}]  }
   0x1   :  { %s15_s14 = sshll.u32 %s1810_s1, 4  ;;  %s17_s16 = sshll.u32 %s1446_s15, 4  ;;  %s16_s14 = int_to_ptr.hbm [resolvable:$true] %s15_s14  ;;  %s18_s16 = int_to_ptr.vmem [resolvable:$true] %s17_s16 }
   0x2   :  { %s1448_s18 = smov 8  }
   0x3   :  { %23 = dma.hbm_to_vmem [thread:$0]  %s16_s14, 7296, %s18_s16, [#allocation3], %s1447_s17, %s1447_s17, %s1448_s18  }
   0x4   :  { %1444 = dma.done.wait [#allocation3], 7296  }
   0x5   :  { %1445 = vsyncadd [#allocation3], 4294960000  ;;  %vm98_vm0 = vcmask 1043456   ;;  %vm49_vm1 = vcmask 31744   ;;  %v47_v0 = vld [vmem:[#allocation2 + $0x88] sm:$0xf] }
   0x6   :  { %v31_v1 = vld [vmem:[%s1809_s0] sm:$0xff]  ;;  %1308 = vmatpush.msk.msra.mxu0 %vm98_vm0, %v47_v0  ;;  %v32_v2 = vld [vmem:[%s1809_s0 + $0x8] sm:$0xff]  ;;  %v33_v3 = vld [vmem:[%s1809_s0 + $0x10] sm:$0xff]  ;;  %vm186_vm2 = vcmask 130048   ;;  %vm405_vm3 = vcmask 261120  }
   0x7   :  { %1309 = vmatmul.msk.f32.vlgmr.msra.gmra.mxu0 %vm49_vm1, %v31_v1  ;;  %v34_v4 = vld [vmem:[%s1809_s0 + $0x18] sm:$0xff]  ;;  %v35_v5 = vld [vmem:[%s1809_s0 + $0x20] sm:$0xff]  ;;  %v36_v6 = vld [vmem:[%s1809_s0 + $0x28] sm:$0xff] }
   0x8   :  { %v37_v7 = vld [vmem:[%s1809_s0 + $0x30] sm:$0xff]  ;;  %v38_v8 = vld [vmem:[%s1809_s0 + $0x38] sm:$0xff]  ;;  %v39_v9 = vld [vmem:[%s1809_s0 + $0x40] sm:$0xff] }
   0x9   :  { %v40_v10 = vld [vmem:[%s1809_s0 + $0x48] sm:$0xff]  ;;  %v41_v11 = vld [vmem:[%s1809_s0 + $0x50] sm:$0xff]  ;;  %v42_v12 = vld [vmem:[%s1809_s0 + $0x58] sm:$0xff] }
   0xa   :  { %v43_v13 = vld [vmem:[%s1809_s0 + $0x60] sm:$0xff]  ;;  %v184_v14 = vld [vmem:[#allocation2 + $0x98] sm:$0xff]  ;;  %v183_v15 = vld [vmem:[#allocation2 + $0x90] sm:$0xff] }
   0xb   :  { %249 = vmatpush.msra.mxu1 %v184_v14  ;;  %v44_v16 = vld [vmem:[%s1809_s0 + $0x68] sm:$0xff]  ;;  %v45_v17 = vld [vmem:[%s1809_s0 + $0x70] sm:$0xff]  ;;  %v46_v18 = vld [vmem:[%s1809_s0 + $0x78] sm:$0xff] }
   0xc   :  { %v1535_v19 = vld [vmem:[#allocation2 + $0x1c0] sm:$0xff]  ;;  %v400_v57 = vld [vmem:[#allocation2 + $0xb8] sm:$0xff]  ;;  %v399_v60 = vld [vmem:[#allocation2 + $0xb0] sm:$0xff] }
   0xd   :  { %250 = vmatpush.msra.mxu1 %v183_v15  ;;  %v1539_v20 = vperm.slane %v1535_v19, 0  ;;  %579 = vmatpush.msrb.mxu0 %v400_v57  ;;  %v398_v62 = vld [vmem:[#allocation2 + $0xa8] sm:$0xff]  ;;  %v397_v63 = vld [vmem:[#allocation2 + $0xa0] sm:$0xff] }
   0xf   :  { %1310 = vmatmul.msk.f32.gmra.mxu0 %vm49_vm1, %v32_v2 }
  0x10   :  { %580 = vmatpush.msrb.mxu0 %v399_v60  ;;  %v317_v60 = vld [vmem:[#allocation2 + $0x8] sm:$0xff] }
  0x12   :  { %581 = vmatpush.msrb.mxu0 %v398_v62  ;;  %v319_v62 = vld [vmem:[#allocation2 + $0x18] sm:$0xff] }
  0x14   :  { %582 = vmatpush.msrb.mxu0 %v397_v63  ;;  %v320_v63 = vld [vmem:[#allocation2 + $0x20] sm:$0xff] }
  0x17   :  { %1311 = vmatmul.msk.f32.gmra.mxu0 %vm49_vm1, %v33_v3 }
  0x1f   :  { %1312 = vmatmul.msk.f32.gmra.mxu0 %vm49_vm1, %v34_v4 }
  0x27   :  { %1313 = vmatmul.msk.f32.gmra.mxu0 %vm49_vm1, %v35_v5 }
  0x2f   :  { %1314 = vmatmul.msk.f32.gmra.mxu0 %vm49_vm1, %v36_v6 }
  0x37   :  { %1315 = vmatmul.msk.f32.gmra.mxu0 %vm49_vm1, %v37_v7 }
  0x3f   :  { %1316 = vmatmul.msk.f32.gmra.mxu0 %vm49_vm1, %v38_v8 }
  0x47   :  { %1317 = vmatmul.msk.f32.gmra.mxu0 %vm49_vm1, %v39_v9  ;;  %v1574_v9 = vperm.slane %v1535_v19, 1 }
  0x4f   :  { %1318 = vmatmul.msk.f32.gmra.mxu0 %vm49_vm1, %v40_v10 }
  0x57   :  { %1319 = vmatmul.msk.f32.gmra.mxu0 %vm49_vm1, %v41_v11 }
  0x5f   :  { %1320 = vmatmul.msk.f32.gmra.mxu0 %vm49_vm1, %v42_v12 }
  0x67   :  { %1321 = vmatmul.msk.f32.gmra.mxu0 %vm49_vm1, %v43_v13 }
  0x6f   :  { %1322 = vmatmul.msk.f32.gmra.mxu0 %vm49_vm1, %v44_v16 }
  0x77   :  { %1323 = vmatmul.msk.f32.gmra.mxu0 %vm49_vm1, %v45_v17 }
  0x7f   :  { %1324 = vmatmul.msk.f32.gmra.mxu0 %vm49_vm1, %v46_v18 }
  0x84   :  { %v119_v21 = vpop.f32.mrf.mxu0 }
  0x85   :  { %v120_v22 = vadd.f32 %v119_v21, %v1539_v20 }
  0x87   :  { %v167_v23 = vmax.f32 %v120_v22, 0.0 }
  0x89   :  { %1325 = vmatmul.msk.f32.vlgmr.msra.gmra.mxu1 %vm186_vm2, %v167_v23 }
  0x8c   :  { %v122_v24 = vpop.f32.mrf.mxu0 }
  0x8d   :  { %v123_v25 = vadd.f32 %v122_v24, %v1539_v20 }
  0x8f   :  { %v168_v26 = vmax.f32 %v123_v25, 0.0 }
  0x91   :  { %1326 = vmatmul.msk.f32.gmra.mxu1 %vm186_vm2, %v168_v26 }
  0x94   :  { %v125_v27 = vpop.f32.mrf.mxu0 }
  0x95   :  { %v126_v28 = vadd.f32 %v125_v27, %v1539_v20 }
  0x97   :  { %v169_v29 = vmax.f32 %v126_v28, 0.0 }
  0x99   :  { %1327 = vmatmul.msk.f32.gmra.mxu1 %vm186_vm2, %v169_v29 }
  0x9c   :  { %v128_v30 = vpop.f32.mrf.mxu0 }
  0x9d   :  { %v129_v31 = vadd.f32 %v128_v30, %v1539_v20 }
  0x9f   :  { %v170_v32 = vmax.f32 %v129_v31, 0.0 }
  0xa1   :  { %1328 = vmatmul.msk.f32.gmra.mxu1 %vm186_vm2, %v170_v32 }
  0xa4   :  { %v131_v33 = vpop.f32.mrf.mxu0 }
  0xa5   :  { %v132_v34 = vadd.f32 %v131_v33, %v1539_v20 }
  0xa7   :  { %v171_v35 = vmax.f32 %v132_v34, 0.0 }
  0xa9   :  { %1329 = vmatmul.msk.f32.gmra.mxu1 %vm186_vm2, %v171_v35 }
  0xac   :  { %v134_v36 = vpop.f32.mrf.mxu0 }
  0xad   :  { %v135_v37 = vadd.f32 %v134_v36, %v1539_v20 }
  0xaf   :  { %v172_v38 = vmax.f32 %v135_v37, 0.0 }
  0xb1   :  { %1330 = vmatmul.msk.f32.gmra.mxu1 %vm186_vm2, %v172_v38 }
  0xb4   :  { %v137_v39 = vpop.f32.mrf.mxu0 }
  0xb5   :  { %v138_v40 = vadd.f32 %v137_v39, %v1539_v20 }
  0xb7   :  { %v173_v41 = vmax.f32 %v138_v40, 0.0 }
  0xb9   :  { %1331 = vmatmul.msk.f32.gmra.mxu1 %vm186_vm2, %v173_v41 }
  0xbc   :  { %v140_v42 = vpop.f32.mrf.mxu0 }
  0xbd   :  { %v141_v43 = vadd.f32 %v140_v42, %v1539_v20 }
  0xbf   :  { %v174_v44 = vmax.f32 %v141_v43, 0.0 }
  0xc1   :  { %1332 = vmatmul.msk.f32.gmra.mxu1 %vm186_vm2, %v174_v44 }
  0xc4   :  { %v143_v45 = vpop.f32.mrf.mxu0 }
  0xc5   :  { %v144_v46 = vadd.f32 %v143_v45, %v1539_v20 }
  0xc7   :  { %v175_v47 = vmax.f32 %v144_v46, 0.0 }
  0xc9   :  { %1333 = vmatmul.msk.f32.gmra.mxu1 %vm186_vm2, %v175_v47 }
  0xcc   :  { %v146_v48 = vpop.f32.mrf.mxu0 }
  0xcd   :  { %v147_v49 = vadd.f32 %v146_v48, %v1539_v20 }
  0xcf   :  { %v176_v50 = vmax.f32 %v147_v49, 0.0 }
  0xd1   :  { %1334 = vmatmul.msk.f32.gmra.mxu1 %vm186_vm2, %v176_v50 }
  0xd4   :  { %v149_v51 = vpop.f32.mrf.mxu0 }
  0xd5   :  { %v150_v52 = vadd.f32 %v149_v51, %v1539_v20 }
  0xd7   :  { %v177_v53 = vmax.f32 %v150_v52, 0.0 }
  0xd9   :  { %1335 = vmatmul.msk.f32.gmra.mxu1 %vm186_vm2, %v177_v53 }
  0xdc   :  { %v152_v54 = vpop.f32.mrf.mxu0 }
  0xdd   :  { %v153_v55 = vadd.f32 %v152_v54, %v1539_v20 }
  0xdf   :  { %v178_v56 = vmax.f32 %v153_v55, 0.0 }
  0xe1   :  { %1336 = vmatmul.msk.f32.gmra.mxu1 %vm186_vm2, %v178_v56 }
  0xe4   :  { %v155_v58 = vpop.f32.mrf.mxu0 }
  0xe5   :  { %v156_v59 = vadd.f32 %v155_v58, %v1539_v20 }
  0xe7   :  { %v179_v61 = vmax.f32 %v156_v59, 0.0  ;;  %v316_v59 = vld [vmem:[#allocation2] sm:$0xff] }
  0xe9   :  { %1337 = vmatmul.msk.f32.gmra.mxu1 %vm186_vm2, %v179_v61  ;;  %v318_v61 = vld [vmem:[#allocation2 + $0x10] sm:$0xff] }
  0xec   :  { %v158_v0 = vpop.f32.mrf.mxu0 }
  0xed   :  { %v159_v1 = vadd.f32 %v158_v0, %v1539_v20  ;;  %v321_v0 = vld [vmem:[#allocation2 + $0x28] sm:$0xff] }
  0xef   :  { %v180_v2 = vmax.f32 %v159_v1, 0.0  ;;  %v322_v1 = vld [vmem:[#allocation2 + $0x30] sm:$0xff] }
  0xf1   :  { %1338 = vmatmul.msk.f32.gmra.mxu1 %vm186_vm2, %v180_v2  ;;  %v323_v2 = vld [vmem:[#allocation2 + $0x38] sm:$0xff] }
  0xf4   :  { %v161_v3 = vpop.f32.mrf.mxu0 }
  0xf5   :  { %v162_v4 = vadd.f32 %v161_v3, %v1539_v20  ;;  %v324_v3 = vld [vmem:[#allocation2 + $0x40] sm:$0xff] }
  0xf7   :  { %v181_v5 = vmax.f32 %v162_v4, 0.0  ;;  %v325_v4 = vld [vmem:[#allocation2 + $0x48] sm:$0xff] }
  0xf9   :  { %1339 = vmatmul.msk.f32.gmra.mxu1 %vm186_vm2, %v181_v5  ;;  %v326_v5 = vld [vmem:[#allocation2 + $0x50] sm:$0xff] }
  0xfc   :  { %v164_v6 = vpop.f32.mrf.mxu0 }
  0xfd   :  { %v165_v7 = vadd.f32 %v164_v6, %v1539_v20  ;;  %v327_v6 = vld [vmem:[#allocation2 + $0x58] sm:$0xff] }
  0xff   :  { %v182_v8 = vmax.f32 %v165_v7, 0.0  ;;  %v404_v7 = vld [vmem:[#allocation2 + $0xd8] sm:$0xff] }
 0x100   :  { %466 = vmatpush.msra.mxu3 %v404_v7 }
 0x101   :  { %1340 = vmatmul.msk.f32.gmra.mxu1 %vm186_vm2, %v182_v8  ;;  %v403_v8 = vld [vmem:[#allocation2 + $0xd0] sm:$0xff] }
 0x102   :  { %467 = vmatpush.msra.mxu3 %v403_v8 }
 0x106   :  { %v252_v10 = vpop.f32.mrf.mxu1 }
 0x107   :  { %v1577_v11 = vadd.f32 %v252_v10, %v1574_v9  ;;  %v328_v10 = vld [vmem:[#allocation2 + $0x60] sm:$0xff] }
 0x109   :  { %v300_v12 = vmax.f32 %v1577_v11, 0.0  ;;  %v401_v11 = vld [vmem:[#allocation2 + $0xc0] sm:$0xff] }
 0x10b   :  { %1357 = vmatmul.msk.f32.vlgmr.msrb.gmra.mxu0 %vm405_vm3, %v300_v12 }
 0x10e   :  { %v255_v13 = vpop.f32.mrf.mxu1 }
 0x10f   :  { %v1584_v14 = vadd.f32 %v255_v13, %v1574_v9  ;;  %v330_v13 = vld [vmem:[#allocation2 + $0x70] sm:$0xff] }
 0x111   :  { %v301_v15 = vmax.f32 %v1584_v14, 0.0  ;;  %v331_v14 = vld [vmem:[#allocation2 + $0x78] sm:$0xff] }
 0x113   :  { %1358 = vmatmul.msk.f32.gmra.mxu0 %vm405_vm3, %v301_v15 }
 0x116   :  { %v258_v16 = vpop.f32.mrf.mxu1 }
 0x117   :  { %v1591_v17 = vadd.f32 %v258_v16, %v1574_v9  ;;  %v668_v16 = vld [vmem:[#allocation2 + $0xf8] sm:$0xff] }
 0x118   :  { %730 = vmatpush.msrb.mxu1 %v668_v16 }
 0x119   :  { %v302_v18 = vmax.f32 %v1591_v17, 0.0 }
 0x11b   :  { %1359 = vmatmul.msk.f32.gmra.mxu0 %vm405_vm3, %v302_v18 }
 0x11e   :  { %v261_v20 = vpop.f32.mrf.mxu1 }
 0x11f   :  { %v1598_v21 = vadd.f32 %v261_v20, %v1574_v9 }
 0x121   :  { %v303_v22 = vmax.f32 %v1598_v21, 0.0 }
 0x123   :  { %1360 = vmatmul.msk.f32.gmra.mxu0 %vm405_vm3, %v303_v22 }
 0x126   :  { %v264_v23 = vpop.f32.mrf.mxu1 }
 0x127   :  { %v265_v24 = vadd.f32 %v264_v23, %v1574_v9 }
 0x129   :  { %v304_v25 = vmax.f32 %v265_v24, 0.0 }
 0x12b   :  { %1361 = vmatmul.msk.f32.gmra.mxu0 %vm405_vm3, %v304_v25 }
 0x12e   :  { %v267_v26 = vpop.f32.mrf.mxu1 }
 0x12f   :  { %v268_v27 = vadd.f32 %v267_v26, %v1574_v9 }
 0x131   :  { %v305_v28 = vmax.f32 %v268_v27, 0.0  ;;  %v666_v27 = vld [vmem:[#allocation2 + $0xe8] sm:$0xff] }
 0x133   :  { %1362 = vmatmul.msk.f32.gmra.mxu0 %vm405_vm3, %v305_v28 }
 0x136   :  { %v270_v29 = vpop.f32.mrf.mxu1 }
 0x137   :  { %v271_v30 = vadd.f32 %v270_v29, %v1574_v9 }
 0x139   :  { %v306_v31 = vmax.f32 %v271_v30, 0.0 }
 0x13b   :  { %1363 = vmatmul.msk.f32.gmra.mxu0 %vm405_vm3, %v306_v31 }
 0x13e   :  { %v273_v32 = vpop.f32.mrf.mxu1 }
 0x13f   :  { %v274_v33 = vadd.f32 %v273_v32, %v1574_v9 }
 0x141   :  { %v307_v34 = vmax.f32 %v274_v33, 0.0 }
 0x143   :  { %1364 = vmatmul.msk.f32.gmra.mxu0 %vm405_vm3, %v307_v34 }
 0x146   :  { %v276_v35 = vpop.f32.mrf.mxu1 }
 0x147   :  { %v277_v36 = vadd.f32 %v276_v35, %v1574_v9 }
 0x149   :  { %v308_v37 = vmax.f32 %v277_v36, 0.0 }
 0x14b   :  { %1365 = vmatmul.msk.f32.gmra.mxu0 %vm405_vm3, %v308_v37 }
 0x14e   :  { %v279_v38 = vpop.f32.mrf.mxu1 }
 0x14f   :  { %v280_v39 = vadd.f32 %v279_v38, %v1574_v9 }
 0x151   :  { %v309_v40 = vmax.f32 %v280_v39, 0.0  ;;  %v1649_v39 = vperm.slane %v1535_v19, 2 }
 0x153   :  { %1366 = vmatmul.msk.f32.gmra.mxu0 %vm405_vm3, %v309_v40 }
 0x156   :  { %v282_v41 = vpop.f32.mrf.mxu1 }
 0x157   :  { %v283_v42 = vadd.f32 %v282_v41, %v1574_v9 }
 0x159   :  { %v310_v43 = vmax.f32 %v283_v42, 0.0 }
 0x15b   :  { %1367 = vmatmul.msk.f32.gmra.mxu0 %vm405_vm3, %v310_v43 }
 0x15e   :  { %v285_v44 = vpop.f32.mrf.mxu1 }
 0x15f   :  { %v286_v45 = vadd.f32 %v285_v44, %v1574_v9 }
 0x161   :  { %v311_v46 = vmax.f32 %v286_v45, 0.0 }
 0x163   :  { %1368 = vmatmul.msk.f32.gmra.mxu0 %vm405_vm3, %v311_v46 }
 0x166   :  { %v288_v47 = vpop.f32.mrf.mxu1 }
 0x167   :  { %v289_v48 = vadd.f32 %v288_v47, %v1574_v9 }
 0x169   :  { %v312_v49 = vmax.f32 %v289_v48, 0.0 }
 0x16b   :  { %1369 = vmatmul.msk.f32.gmra.mxu0 %vm405_vm3, %v312_v49 }
 0x16e   :  { %v291_v50 = vpop.f32.mrf.mxu1 }
 0x16f   :  { %v292_v51 = vadd.f32 %v291_v50, %v1574_v9 }
 0x171   :  { %v313_v52 = vmax.f32 %v292_v51, 0.0 }
 0x173   :  { %1370 = vmatmul.msk.f32.gmra.mxu0 %vm405_vm3, %v313_v52 }
 0x176   :  { %v294_v53 = vpop.f32.mrf.mxu1 }
 0x177   :  { %v295_v54 = vadd.f32 %v294_v53, %v1574_v9 }
 0x179   :  { %v314_v55 = vmax.f32 %v295_v54, 0.0 }
 0x17b   :  { %1371 = vmatmul.msk.f32.gmra.mxu0 %vm405_vm3, %v314_v55 }
 0x17e   :  { %v297_v56 = vpop.f32.mrf.mxu1 }
 0x17f   :  { %v298_v57 = vadd.f32 %v297_v56, %v1574_v9  ;;  %v402_v9 = vld [vmem:[#allocation2 + $0xc8] sm:$0xff] }
 0x180   :  { %468 = vmatpush.msra.mxu3 %v402_v9 }
 0x181   :  { %v315_v58 = vmax.f32 %v298_v57, 0.0 }
 0x182   :  { %469 = vmatpush.msra.mxu3 %v401_v11 }
 0x183   :  { %332 = vmatpush.msra.mxu2 %v315_v58  ;;  %1372 = vmatmul.msk.f32.gmra.mxu0 %vm405_vm3, %v315_v58 }
 0x185   :  { %333 = vmatpush.msra.mxu2 %v314_v55 }
 0x187   :  { %334 = vmatpush.msra.mxu2 %v313_v52 }
 0x188   :  { %v584_v32 = vpop.f32.mrf.mxu0 }
 0x189   :  { %335 = vmatpush.msra.mxu2 %v312_v49 }
 0x18b   :  { %336 = vmatpush.msra.mxu2 %v311_v46 }
 0x18d   :  { %337 = vmatpush.msra.mxu2 %v310_v43 }
 0x18f   :  { %338 = vmatpush.msra.mxu2 %v309_v40 }
 0x190   :  { %v587_v35 = vpop.f32.mrf.mxu0 }
 0x191   :  { %339 = vmatpush.msra.mxu2 %v308_v37 }
 0x193   :  { %340 = vmatpush.msra.mxu2 %v307_v34  ;;  %v665_v34 = vld [vmem:[#allocation2 + $0xe0] sm:$0xff] }
 0x195   :  { %341 = vmatpush.msra.mxu2 %v306_v31 }
 0x197   :  { %342 = vmatpush.msra.mxu2 %v305_v28 }
 0x198   :  { %v590_v38 = vpop.f32.mrf.mxu0 }
 0x199   :  { %343 = vmatpush.msra.mxu2 %v304_v25 }
 0x19b   :  { %344 = vmatpush.msra.mxu2 %v303_v22  ;;  %v667_v22 = vld [vmem:[#allocation2 + $0xf0] sm:$0xff] }
 0x19c   :  { %731 = vmatpush.msrb.mxu1 %v667_v22 }
 0x19d   :  { %345 = vmatpush.msra.mxu2 %v302_v18 }
 0x19e   :  { %732 = vmatpush.msrb.mxu1 %v666_v27 }
 0x19f   :  { %346 = vmatpush.msra.mxu2 %v301_v15 }
 0x1a0   :  { %733 = vmatpush.msrb.mxu1 %v665_v34  ;;  %v593_v40 = vpop.f32.mrf.mxu0 }
 0x1a1   :  { %347 = vmatpush.msra.mxu2 %v300_v12  ;;  %v329_v12 = vld [vmem:[#allocation2 + $0x68] sm:$0xff] }
 0x1a2   :  { %348 = vmatmul.f32.vlgmr.msra.gmra.mxu2 %v316_v59 }
 0x1a8   :  { %v596_v47 = vpop.f32.mrf.mxu0 }
 0x1aa   :  { %351 = vmatmul.f32.gmra.mxu2 %v317_v60 }
 0x1b0   :  { %v599_v53 = vpop.f32.mrf.mxu0 }
 0x1b2   :  { %354 = vmatmul.f32.gmra.mxu2 %v318_v61 }
 0x1b8   :  { %v602_v59 = vpop.f32.mrf.mxu0 }
 0x1ba   :  { %357 = vmatmul.f32.gmra.mxu2 %v319_v62 }
 0x1c2   :  { %360 = vmatmul.f32.gmra.mxu2 %v320_v63 }
 0x1ca   :  { %363 = vmatmul.f32.gmra.mxu2 %v321_v0  ;;  %v605_v0 = vpop.f32.mrf.mxu0 }
 0x1d2   :  { %366 = vmatmul.f32.gmra.mxu2 %v322_v1  ;;  %v608_v7 = vpop.f32.mrf.mxu0 }
 0x1da   :  { %369 = vmatmul.f32.gmra.mxu2 %v323_v2 }
 0x1e2   :  { %372 = vmatmul.f32.gmra.mxu2 %v324_v3 }
 0x1ea   :  { %375 = vmatmul.f32.gmra.mxu2 %v325_v4 }
 0x1f2   :  { %378 = vmatmul.f32.gmra.mxu2 %v326_v5 }
 0x1fa   :  { %381 = vmatmul.f32.gmra.mxu2 %v327_v6 }
 0x202   :  { %384 = vmatmul.f32.gmra.mxu2 %v328_v10 }
 0x20a   :  { %387 = vmatmul.f32.gmra.mxu2 %v329_v12 }
 0x212   :  { %390 = vmatmul.f32.gmra.mxu2 %v330_v13  ;;  %v611_v13 = vpop.f32.mrf.mxu0 }
 0x21a   :  { %393 = vmatmul.f32.gmra.mxu2 %v331_v14  ;;  %v614_v22 = vpop.f32.mrf.mxu0 }
 0x222   :  { %v617_v27 = vpop.f32.mrf.mxu0 }
 0x225   :  { %v349_v15 = vpop.f32.mrf.mxu2 }
 0x226   :  { %1341 = vmatmul.msk.f32.vlgmr.msra.gmra.mxu3 %vm405_vm3, %v349_v15 }
 0x22a   :  { %v620_v34 = vpop.f32.mrf.mxu0 }
 0x22d   :  { %v352_v17 = vpop.f32.mrf.mxu2 }
 0x22e   :  { %1342 = vmatmul.msk.f32.gmra.mxu3 %vm405_vm3, %v352_v17 }
 0x235   :  { %v355_v18 = vpop.f32.mrf.mxu2 }
 0x236   :  { %1343 = vmatmul.msk.f32.gmra.mxu3 %vm405_vm3, %v355_v18 }
 0x23d   :  { %v358_v20 = vpop.f32.mrf.mxu2 }
 0x23e   :  { %1344 = vmatmul.msk.f32.gmra.mxu3 %vm405_vm3, %v358_v20  ;;  %v806_v20 = vld [vmem:[#allocation2 + $0x138] sm:$0xff] }
 0x23f   :  { %831 = vmatpush.msrb.mxu3 %v806_v20 }
 0x245   :  { %v361_v21 = vpop.f32.mrf.mxu2 }
 0x246   :  { %1345 = vmatmul.msk.f32.gmra.mxu3 %vm405_vm3, %v361_v21  ;;  %v802_v21 = vld [vmem:[#allocation2 + $0x118] sm:$0xff] }
 0x247   :  { %872 = vmatpush.msrb.mxu2 %v802_v21 }
 0x24d   :  { %v364_v23 = vpop.f32.mrf.mxu2 }
 0x24e   :  { %1346 = vmatmul.msk.f32.gmra.mxu3 %vm405_vm3, %v364_v23 }
 0x255   :  { %v367_v24 = vpop.f32.mrf.mxu2 }
 0x256   :  { %1347 = vmatmul.msk.f32.gmra.mxu3 %vm405_vm3, %v367_v24 }
 0x25d   :  { %v370_v25 = vpop.f32.mrf.mxu2 }
 0x25e   :  { %1348 = vmatmul.msk.f32.gmra.mxu3 %vm405_vm3, %v370_v25 }
 0x265   :  { %v373_v26 = vpop.f32.mrf.mxu2 }
 0x266   :  { %1349 = vmatmul.msk.f32.gmra.mxu3 %vm405_vm3, %v373_v26 }
 0x26d   :  { %v376_v28 = vpop.f32.mrf.mxu2 }
 0x26e   :  { %1350 = vmatmul.msk.f32.gmra.mxu3 %vm405_vm3, %v376_v28 }
 0x275   :  { %v379_v29 = vpop.f32.mrf.mxu2 }
 0x276   :  { %1351 = vmatmul.msk.f32.gmra.mxu3 %vm405_vm3, %v379_v29 }
 0x27d   :  { %v382_v30 = vpop.f32.mrf.mxu2 }
 0x27e   :  { %1352 = vmatmul.msk.f32.gmra.mxu3 %vm405_vm3, %v382_v30 }
 0x285   :  { %v385_v31 = vpop.f32.mrf.mxu2 }
 0x286   :  { %1353 = vmatmul.msk.f32.gmra.mxu3 %vm405_vm3, %v385_v31 }
 0x28d   :  { %v388_v33 = vpop.f32.mrf.mxu2 }
 0x28e   :  { %1354 = vmatmul.msk.f32.gmra.mxu3 %vm405_vm3, %v388_v33 }
 0x295   :  { %v391_v36 = vpop.f32.mrf.mxu2 }
 0x296   :  { %1355 = vmatmul.msk.f32.gmra.mxu3 %vm405_vm3, %v391_v36 }
 0x29d   :  { %v394_v37 = vpop.f32.mrf.mxu2 }
 0x29e   :  { %1356 = vmatmul.msk.f32.gmra.mxu3 %vm405_vm3, %v394_v37  ;;  %v805_v37 = vld [vmem:[#allocation2 + $0x130] sm:$0xff] }
 0x29f   :  { %832 = vmatpush.msrb.mxu3 %v805_v37 }
 0x2a9   :  { %v471_v41 = vpop.f32.mrf.mxu3 }
 0x2aa   :  { %v585_v42 = vadd.f32 %v584_v32, %v471_v41 }
 0x2ac   :  { %v633_v43 = vadd.f32 %v1649_v39, %v585_v42 }
 0x2ae   :  { %v649_v44 = vmax.f32 %v633_v43, 0.0  ;;  %v623_v43 = vpop.f32.mrf.mxu0 }
 0x2b0   :  { %1373 = vmatmul.msk.f32.vlgmr.msrb.gmra.mxu1 %vm405_vm3, %v649_v44 }
 0x2b1   :  { %v474_v45 = vpop.f32.mrf.mxu3 }
 0x2b2   :  { %v588_v46 = vadd.f32 %v587_v35, %v474_v45  ;;  %v800_v45 = vld [vmem:[#allocation2 + $0x108] sm:$0xff] }
 0x2b4   :  { %v634_v48 = vadd.f32 %v1649_v39, %v588_v46  ;;  %v799_v46 = vld [vmem:[#allocation2 + $0x100] sm:$0xff] }
 0x2b6   :  { %v650_v49 = vmax.f32 %v634_v48, 0.0 }
 0x2b8   :  { %1374 = vmatmul.msk.f32.gmra.mxu1 %vm405_vm3, %v650_v49 }
 0x2b9   :  { %v477_v50 = vpop.f32.mrf.mxu3 }
 0x2ba   :  { %v591_v51 = vadd.f32 %v590_v38, %v477_v50  ;;  %v801_v38 = vld [vmem:[#allocation2 + $0x110] sm:$0xff] }
 0x2bb   :  { %873 = vmatpush.msrb.mxu2 %v801_v38 }
 0x2bc   :  { %v635_v52 = vadd.f32 %v1649_v39, %v591_v51  ;;  %v626_v51 = vpop.f32.mrf.mxu0 }
 0x2bd   :  { %874 = vmatpush.msrb.mxu2 %v800_v45 }
 0x2be   :  { %v651_v54 = vmax.f32 %v635_v52, 0.0 }
 0x2bf   :  { %875 = vmatpush.msrb.mxu2 %v799_v46 }
 0x2c0   :  { %1375 = vmatmul.msk.f32.gmra.mxu1 %vm405_vm3, %v651_v54 }
 0x2c1   :  { %v480_v55 = vpop.f32.mrf.mxu3 }
 0x2c2   :  { %v594_v56 = vadd.f32 %v593_v40, %v480_v55 }
 0x2c4   :  { %v636_v57 = vadd.f32 %v1649_v39, %v594_v56  ;;  %v629_v56 = vpop.f32.mrf.mxu0 }
 0x2c6   :  { %v652_v58 = vmax.f32 %v636_v57, 0.0 }
 0x2c8   :  { %1376 = vmatmul.msk.f32.gmra.mxu1 %vm405_vm3, %v652_v58 }
 0x2c9   :  { %v483_v60 = vpop.f32.mrf.mxu3 }
 0x2ca   :  { %v597_v61 = vadd.f32 %v596_v47, %v483_v60 }
 0x2cc   :  { %v637_v62 = vadd.f32 %v1649_v39, %v597_v61  ;;  %v804_v61 = vld [vmem:[#allocation2 + $0x128] sm:$0xff] }
 0x2cd   :  { %833 = vmatpush.msrb.mxu3 %v804_v61  ;;  %v998_v61 = vld [vmem:[#allocation2 + $0x190] sm:$0xff] }
 0x2ce   :  { %v653_v63 = vmax.f32 %v637_v62, 0.0  ;;  %v1684_v62 = vperm.slane %v1535_v19, 3 }
 0x2d0   :  { %1377 = vmatmul.msk.f32.gmra.mxu1 %vm405_vm3, %v653_v63 }
 0x2d1   :  { %v486_v1 = vpop.f32.mrf.mxu3 }
 0x2d2   :  { %v600_v2 = vadd.f32 %v599_v53, %v486_v1 }
 0x2d4   :  { %v638_v3 = vadd.f32 %v1649_v39, %v600_v2  ;;  %v803_v2 = vld [vmem:[#allocation2 + $0x120] sm:$0xff] }
 0x2d5   :  { %834 = vmatpush.msrb.mxu3 %v803_v2  ;;  %v996_v2 = vld [vmem:[#allocation2 + $0x180] sm:$0xff] }
 0x2d6   :  { %v654_v4 = vmax.f32 %v638_v3, 0.0 }
 0x2d8   :  { %1378 = vmatmul.msk.f32.gmra.mxu1 %vm405_vm3, %v654_v4 }
 0x2d9   :  { %v489_v5 = vpop.f32.mrf.mxu3 }
 0x2da   :  { %v603_v6 = vadd.f32 %v602_v59, %v489_v5 }
 0x2dc   :  { %v639_v8 = vadd.f32 %v1649_v39, %v603_v6 }
 0x2de   :  { %v655_v9 = vmax.f32 %v639_v8, 0.0 }
 0x2e0   :  { %1379 = vmatmul.msk.f32.gmra.mxu1 %vm405_vm3, %v655_v9 }
 0x2e1   :  { %v492_v10 = vpop.f32.mrf.mxu3 }
 0x2e2   :  { %v606_v11 = vadd.f32 %v605_v0, %v492_v10 }
 0x2e4   :  { %v640_v12 = vadd.f32 %v1649_v39, %v606_v11  ;;  %v892_v11 = vld [vmem:[#allocation2 + $0x158] sm:$0xff] }
 0x2e5   :  { %917 = vmatpush.msra.mxu3 %v892_v11 }
 0x2e6   :  { %v656_v14 = vmax.f32 %v640_v12, 0.0  ;;  %v891_v12 = vld [vmem:[#allocation2 + $0x150] sm:$0xff] }
 0x2e7   :  { %918 = vmatpush.msra.mxu3 %v891_v12 }
 0x2e8   :  { %1380 = vmatmul.msk.f32.gmra.mxu1 %vm405_vm3, %v656_v14 }
 0x2e9   :  { %v495_v15 = vpop.f32.mrf.mxu3 }
 0x2ea   :  { %v609_v16 = vadd.f32 %v608_v7, %v495_v15  ;;  %v890_v15 = vld [vmem:[#allocation2 + $0x148] sm:$0xff] }
 0x2eb   :  { %919 = vmatpush.msra.mxu3 %v890_v15 }
 0x2ec   :  { %v641_v17 = vadd.f32 %v1649_v39, %v609_v16 }
 0x2ee   :  { %v657_v18 = vmax.f32 %v641_v17, 0.0  ;;  %v889_v17 = vld [vmem:[#allocation2 + $0x140] sm:$0xff] }
 0x2ef   :  { %920 = vmatpush.msra.mxu3 %v889_v17 }
 0x2f0   :  { %1381 = vmatmul.msk.f32.gmra.mxu1 %vm405_vm3, %v657_v18 }
 0x2f1   :  { %v498_v23 = vpop.f32.mrf.mxu3 }
 0x2f2   :  { %v612_v24 = vadd.f32 %v611_v13, %v498_v23 }
 0x2f4   :  { %v642_v25 = vadd.f32 %v1649_v39, %v612_v24 }
 0x2f6   :  { %v658_v26 = vmax.f32 %v642_v25, 0.0 }
 0x2f8   :  { %1382 = vmatmul.msk.f32.gmra.mxu1 %vm405_vm3, %v658_v26 }
 0x2f9   :  { %v501_v28 = vpop.f32.mrf.mxu3 }
 0x2fa   :  { %v615_v29 = vadd.f32 %v614_v22, %v501_v28  ;;  %v941_v28 = vld [vmem:[#allocation2 + $0x178] sm:$0xff] }
 0x2fb   :  { %966 = vmatpush.msra.mxu2 %v941_v28 }
 0x2fc   :  { %v643_v30 = vadd.f32 %v1649_v39, %v615_v29  ;;  %v940_v29 = vld [vmem:[#allocation2 + $0x170] sm:$0xff] }
 0x2fd   :  { %967 = vmatpush.msra.mxu2 %v940_v29 }
 0x2fe   :  { %v659_v31 = vmax.f32 %v643_v30, 0.0 }
 0x300   :  { %1383 = vmatmul.msk.f32.gmra.mxu1 %vm405_vm3, %v659_v31 }
 0x301   :  { %v504_v32 = vpop.f32.mrf.mxu3 }
 0x302   :  { %v618_v33 = vadd.f32 %v617_v27, %v504_v32  ;;  %v939_v32 = vld [vmem:[#allocation2 + $0x168] sm:$0xff] }
 0x303   :  { %968 = vmatpush.msra.mxu2 %v939_v32 }
 0x304   :  { %v644_v35 = vadd.f32 %v1649_v39, %v618_v33 }
 0x306   :  { %v660_v36 = vmax.f32 %v644_v35, 0.0 }
 0x308   :  { %1384 = vmatmul.msk.f32.gmra.mxu1 %vm405_vm3, %v660_v36 }
 0x309   :  { %v507_v40 = vpop.f32.mrf.mxu3 }
 0x30a   :  { %v621_v41 = vadd.f32 %v620_v34, %v507_v40  ;;  %v938_v34 = vld [vmem:[#allocation2 + $0x160] sm:$0xff] }
 0x30b   :  { %969 = vmatpush.msra.mxu2 %v938_v34 }
 0x30c   :  { %v645_v42 = vadd.f32 %v1649_v39, %v621_v41 }
 0x30e   :  { %v661_v44 = vmax.f32 %v645_v42, 0.0 }
 0x310   :  { %1385 = vmatmul.msk.f32.gmra.mxu1 %vm405_vm3, %v661_v44 }
 0x311   :  { %v510_v47 = vpop.f32.mrf.mxu3 }
 0x312   :  { %v624_v48 = vadd.f32 %v623_v43, %v510_v47 }
 0x314   :  { %v646_v49 = vadd.f32 %v1649_v39, %v624_v48 }
 0x316   :  { %v662_v50 = vmax.f32 %v646_v49, 0.0 }
 0x318   :  { %1386 = vmatmul.msk.f32.gmra.mxu1 %vm405_vm3, %v662_v50 }
 0x319   :  { %v513_v52 = vpop.f32.mrf.mxu3 }
 0x31a   :  { %v627_v53 = vadd.f32 %v626_v51, %v513_v52 }
 0x31c   :  { %v647_v54 = vadd.f32 %v1649_v39, %v627_v53 }
 0x31e   :  { %v663_v55 = vmax.f32 %v647_v54, 0.0 }
 0x320   :  { %1387 = vmatmul.msk.f32.gmra.mxu1 %vm405_vm3, %v663_v55 }
 0x321   :  { %v516_v57 = vpop.f32.mrf.mxu3 }
 0x322   :  { %v630_v58 = vadd.f32 %v629_v56, %v516_v57 }
 0x324   :  { %v648_v59 = vadd.f32 %v1649_v39, %v630_v58 }
 0x326   :  { %v664_v60 = vmax.f32 %v648_v59, 0.0 }
 0x328   :  { %1388 = vmatmul.msk.f32.gmra.mxu1 %vm405_vm3, %v664_v60  ;;  %v999_v60 = vld [vmem:[#allocation2 + $0x198] sm:$0xff] }
 0x32d   :  { %v735_v63 = vpop.f32.mrf.mxu1 }
 0x32e   :  { %v736_v0 = vadd.f32 %v735_v63, %v1684_v62 }
 0x330   :  { %v783_v1 = vmax.f32 %v736_v0, 0.0  ;;  %v997_v0 = vld [vmem:[#allocation2 + $0x188] sm:$0xff] }
 0x332   :  { %1393 = vmatmul.msk.f32.vlgmr.msrb.gmra.mxu2 %vm405_vm3, %v783_v1 }
 0x335   :  { %v738_v3 = vpop.f32.mrf.mxu1 }
 0x336   :  { %v739_v4 = vadd.f32 %v738_v3, %v1684_v62 }
 0x338   :  { %v784_v39 = vmax.f32 %v739_v4, 0.0 }
 0x33a   :  { %1394 = vmatmul.msk.f32.gmra.mxu2 %vm405_vm3, %v784_v39 }
 0x33d   :  { %v741_v5 = vpop.f32.mrf.mxu1 }
 0x33e   :  { %v742_v6 = vadd.f32 %v741_v5, %v1684_v62 }
 0x340   :  { %v785_v7 = vmax.f32 %v742_v6, 0.0 }
 0x342   :  { %1395 = vmatmul.msk.f32.gmra.mxu2 %vm405_vm3, %v785_v7  ;;  %v987_v7 = vperm.slane %v1535_v19, 4 }
 0x345   :  { %v744_v8 = vpop.f32.mrf.mxu1 }
 0x346   :  { %v745_v9 = vadd.f32 %v744_v8, %v1684_v62 }
 0x348   :  { %v786_v10 = vmax.f32 %v745_v9, 0.0 }
 0x34a   :  { %1396 = vmatmul.msk.f32.gmra.mxu2 %vm405_vm3, %v786_v10 }
 0x34d   :  { %v747_v13 = vpop.f32.mrf.mxu1 }
 0x34e   :  { %v748_v14 = vadd.f32 %v747_v13, %v1684_v62 }
 0x350   :  { %v787_v16 = vmax.f32 %v748_v14, 0.0 }
 0x352   :  { %1389 = vmatmul.msk.f32.vlgmr.msrb.gmra.mxu3 %vm405_vm3, %v787_v16 }
 0x353   :  { %1025 = vmatpush.msrb.mxu3 %v999_v60  ;;  %v1100_v60 = vld [vmem:[%s1811_s2 + $0x8] sm:$0xff] }
 0x355   :  { %v750_v18 = vpop.f32.mrf.mxu1  ;;  %1026 = vmatpush.msrb.mxu3 %v998_v61  ;;  %v1113_v61 = vld [vmem:[%s1811_s2 + $0x70] sm:$0xff] }
 0x356   :  { %v751_v20 = vadd.f32 %v750_v18, %v1684_v62 }
 0x357   :  { %1027 = vmatpush.msrb.mxu3 %v997_v0  ;;  %v1114_v0 = vld [vmem:[%s1811_s2 + $0x78] sm:$0xff] }
 0x358   :  { %v788_v21 = vmax.f32 %v751_v20, 0.0 }
 0x359   :  { %1028 = vmatpush.msrb.mxu3 %v996_v2  ;;  %v1110_v2 = vld [vmem:[%s1811_s2 + $0x58] sm:$0xff] }
 0x35a   :  { %1390 = vmatmul.msk.f32.gmra.mxu3 %vm405_vm3, %v788_v21 }
 0x35d   :  { %v753_v22 = vpop.f32.mrf.mxu1 }
 0x35e   :  { %v754_v23 = vadd.f32 %v753_v22, %v1684_v62 }
 0x360   :  { %v789_v24 = vmax.f32 %v754_v23, 0.0 }
 0x362   :  { %1391 = vmatmul.msk.f32.gmra.mxu3 %vm405_vm3, %v789_v24 }
 0x365   :  { %v756_v25 = vpop.f32.mrf.mxu1 }
 0x366   :  { %v757_v26 = vadd.f32 %v756_v25, %v1684_v62 }
 0x368   :  { %v790_v27 = vmax.f32 %v757_v26, 0.0 }
 0x36a   :  { %1392 = vmatmul.msk.f32.gmra.mxu3 %vm405_vm3, %v790_v27 }
 0x36d   :  { %v759_v30 = vpop.f32.mrf.mxu1 }
 0x36e   :  { %v760_v31 = vadd.f32 %v759_v30, %v1684_v62 }
 0x370   :  { %v791_v33 = vmax.f32 %v760_v31, 0.0 }
 0x372   :  { %1397 = vmatmul.msk.f32.vlgmr.msra.gmra.mxu3 %vm405_vm3, %v791_v33 }
 0x375   :  { %v762_v35 = vpop.f32.mrf.mxu1 }
 0x376   :  { %v763_v36 = vadd.f32 %v762_v35, %v1684_v62 }
 0x378   :  { %v792_v37 = vmax.f32 %v763_v36, 0.0 }
 0x37a   :  { %1398 = vmatmul.msk.f32.gmra.mxu3 %vm405_vm3, %v792_v37  ;;  %v1000_v37 = vperm.slane %v1535_v19, 5  ;;  %v1071_v19 = vld [vmem:[#allocation2 + $0x1a8] sm:$0xff] }
 0x37d   :  { %v765_v38 = vpop.f32.mrf.mxu1 }
 0x37e   :  { %v766_v40 = vadd.f32 %v765_v38, %v1684_v62 }
 0x380   :  { %v793_v41 = vmax.f32 %v766_v40, 0.0 }
 0x382   :  { %1399 = vmatmul.msk.f32.gmra.mxu3 %vm405_vm3, %v793_v41 }
 0x385   :  { %v768_v42 = vpop.f32.mrf.mxu1 }
 0x386   :  { %v769_v43 = vadd.f32 %v768_v42, %v1684_v62 }
 0x388   :  { %v794_v44 = vmax.f32 %v769_v43, 0.0 }
 0x38a   :  { %1400 = vmatmul.msk.f32.gmra.mxu3 %vm405_vm3, %v794_v44 }
 0x38d   :  { %v771_v45 = vpop.f32.mrf.mxu1 }
 0x38e   :  { %v772_v46 = vadd.f32 %v771_v45, %v1684_v62 }
 0x390   :  { %v795_v47 = vmax.f32 %v772_v46, 0.0 }
 0x392   :  { %1401 = vmatmul.msk.f32.vlgmr.msra.gmra.mxu2 %vm405_vm3, %v795_v47 }
 0x395   :  { %v774_v48 = vpop.f32.mrf.mxu1 }
 0x396   :  { %v775_v49 = vadd.f32 %v774_v48, %v1684_v62  ;;  %v1046_v48 = vld [vmem:[#allocation2 + $0x80] sm:$0xff] }
 0x398   :  { %v796_v50 = vmax.f32 %v775_v49, 0.0  ;;  %v1073_v49 = vld [vmem:[#allocation2 + $0x1b8] sm:$0xff] }
 0x39a   :  { %1402 = vmatmul.msk.f32.gmra.mxu2 %vm405_vm3, %v796_v50  ;;  %v1072_v50 = vld [vmem:[#allocation2 + $0x1b0] sm:$0xff] }
 0x39d   :  { %v777_v51 = vpop.f32.mrf.mxu1 }
 0x39e   :  { %v778_v52 = vadd.f32 %v777_v51, %v1684_v62  ;;  %v1070_v51 = vld [vmem:[#allocation2 + $0x1a0] sm:$0xff] }
 0x3a0   :  { %v797_v53 = vmax.f32 %v778_v52, 0.0  ;;  %v1111_v52 = vld [vmem:[%s1811_s2 + $0x60] sm:$0xff] }
 0x3a1   :  { %1141 = vmatpush.msra.mxu3 %v1111_v52 }
 0x3a2   :  { %1403 = vmatmul.msk.f32.gmra.mxu2 %vm405_vm3, %v797_v53  ;;  %v1107_v53 = vld [vmem:[%s1811_s2 + $0x40] sm:$0xff] }
 0x3a3   :  { %1142 = vmatpush.msra.mxu3 %v1107_v53 }
 0x3a5   :  { %v780_v54 = vpop.f32.mrf.mxu1 }
 0x3a6   :  { %v781_v55 = vadd.f32 %v780_v54, %v1684_v62 }
 0x3a8   :  { %v798_v56 = vmax.f32 %v781_v55, 0.0  ;;  %v1112_v55 = vld [vmem:[%s1811_s2 + $0x68] sm:$0xff] }
 0x3aa   :  { %1404 = vmatmul.msk.f32.gmra.mxu2 %vm405_vm3, %v798_v56  ;;  %v1108_v56 = vld [vmem:[%s1811_s2 + $0x48] sm:$0xff] }
 0x3b5   :  { %v877_v59 = vpop.f32.mrf.mxu2 }
 0x3bd   :  { %v880_v1 = vpop.f32.mrf.mxu2 }
 0x3c5   :  { %v883_v4 = vpop.f32.mrf.mxu2 }
 0x3cd   :  { %v886_v62 = vpop.f32.mrf.mxu2 }
 0x3d5   :  { %v836_v57 = vpop.f32.mrf.mxu3 }
 0x3d6   :  { %v878_v5 = vadd.f32 %v877_v59, %v836_v57  ;;  %v1103_v57 = vld [vmem:[%s1811_s2 + $0x20] sm:$0xff] }
 0x3d7   :  { %1143 = vmatpush.msra.mxu3 %v1103_v57  ;;  %v1099_v59 = vld [vmem:[%s1811_s2] sm:$0xff] }
 0x3d9   :  { %1144 = vmatpush.msra.mxu3 %v1099_v59 }
 0x3dd   :  { %v839_v58 = vpop.f32.mrf.mxu3 }
 0x3de   :  { %v881_v12 = vadd.f32 %v880_v1, %v839_v58  ;;  %v1104_v58 = vld [vmem:[%s1811_s2 + $0x28] sm:$0xff]  ;;  %v1105_v1 = vld [vmem:[%s1811_s2 + $0x30] sm:$0xff] }
 0x3e5   :  { %v842_v63 = vpop.f32.mrf.mxu3 }
 0x3e6   :  { %v884_v20 = vadd.f32 %v883_v4, %v842_v63  ;;  %v1109_v63 = vld [vmem:[%s1811_s2 + $0x50] sm:$0xff]  ;;  %v1106_v4 = vld [vmem:[%s1811_s2 + $0x38] sm:$0xff] }
 0x3ed   :  { %v845_v3 = vpop.f32.mrf.mxu3 }
 0x3ee   :  { %v887_v27 = vadd.f32 %v886_v62, %v845_v3  ;;  %v1101_v3 = vld [vmem:[%s1811_s2 + $0x10] sm:$0xff]  ;;  %v1220_v62 = vld [vmem:[%s1811_s2 + $0xd8] sm:$0xff] }
 0x3ef   :  { %1296 = vmatpush.xpose.msra.mxu0 %v1220_v62 }
 0x3f5   :  { %v922_v39 = vpop.f32.mrf.mxu3 }
 0x3f6   :  { %v934_v6 = vadd.f32 %v922_v39, %v878_v5  ;;  %v1102_v39 = vld [vmem:[%s1811_s2 + $0x18] sm:$0xff] }
 0x3f7   :  { %v1216_v5 = vld [vmem:[%s1811_s2 + $0xb8] sm:$0xff] }
 0x3f8   :  { %1297 = vmatpush.xpose.msra.mxu0 %v1216_v5 }
 0x3fd   :  { %v925_v8 = vpop.f32.mrf.mxu3 }
 0x3fe   :  { %v935_v14 = vadd.f32 %v925_v8, %v881_v12  ;;  %v1218_v12 = vld [vmem:[%s1811_s2 + $0xc8] sm:$0xff] }
 0x405   :  { %v928_v17 = vpop.f32.mrf.mxu3 }
 0x406   :  { %v936_v22 = vadd.f32 %v928_v17, %v884_v20  ;;  %v1411_v17 = vld [vmem:[%s1811_s2 + $0x80] ss:$8 sm:$0xf] }
 0x407   :  { %v1119_v20 = vperm.slane %v1411_v17, 1 }
 0x40d   :  { %v931_v26 = vpop.f32.mrf.mxu3 }
 0x40e   :  { %v937_v29 = vadd.f32 %v931_v26, %v887_v27  ;;  %v1120_v27 = vperm.slane %v1411_v17, 2 }
 0x415   :  { %v971_v9 = vpop.f32.mrf.mxu2 }
 0x416   :  { %v983_v10 = vadd.f32 %v971_v9, %v934_v6  ;;  %v1419_v6 = vld [vmem:[#allocation2 + $0x1c0] sm:$0xff] }
 0x418   :  { %v988_v11 = vadd.f32 %v987_v7, %v983_v10 }
 0x41a   :  { %v992_v13 = vmax.f32 %v988_v11, 0.0  ;;  %v1217_v11 = vld [vmem:[%s1811_s2 + $0xc0] sm:$0xff] }
 0x41c   :  { %1405 = vmatmul.msk.f32.vlgmr.msrb.gmra.mxu3 %vm405_vm3, %v992_v13  ;;  %v1213_v13 = vld [vmem:[%s1811_s2 + $0xa0] sm:$0xff] }
 0x41d   :  { %v974_v15 = vpop.f32.mrf.mxu2  ;;  %1181 = vmatpush.msrb.mxu3 %v1113_v61 }
 0x41e   :  { %v984_v16 = vadd.f32 %v974_v15, %v935_v14  ;;  %v1214_v14 = vld [vmem:[%s1811_s2 + $0xa8] sm:$0xff]  ;;  %v1219_v15 = vld [vmem:[%s1811_s2 + $0xd0] sm:$0xff] }
 0x41f   :  { %1182 = vmatpush.msrb.mxu3 %v1109_v63 }
 0x420   :  { %v989_v18 = vadd.f32 %v987_v7, %v984_v16  ;;  %v1215_v16 = vld [vmem:[%s1811_s2 + $0xb0] sm:$0xff] }
 0x421   :  { %1183 = vmatpush.msrb.mxu3 %v1105_v1 }
 0x422   :  { %v993_v21 = vmax.f32 %v989_v18, 0.0  ;;  %v1118_v18 = vperm.slane %v1411_v17, 0 }
 0x423   :  { %1184 = vmatpush.msrb.mxu3 %v1101_v3 }
 0x424   :  { %1406 = vmatmul.msk.f32.gmra.mxu3 %vm405_vm3, %v993_v21 }
 0x425   :  { %v977_v23 = vpop.f32.mrf.mxu2 }
 0x426   :  { %v985_v24 = vadd.f32 %v977_v23, %v936_v22 }
 0x428   :  { %v990_v25 = vadd.f32 %v987_v7, %v985_v24 }
 0x42a   :  { %v994_v28 = vmax.f32 %v990_v25, 0.0 }
 0x42c   :  { %1407 = vmatmul.msk.f32.gmra.mxu3 %vm405_vm3, %v994_v28  ;;  %v1121_v28 = vperm.slane %v1411_v17, 3 }
 0x42d   :  { %v980_v30 = vpop.f32.mrf.mxu2 }
 0x42e   :  { %v986_v31 = vadd.f32 %v980_v30, %v937_v29 }
 0x430   :  { %v991_v32 = vadd.f32 %v987_v7, %v986_v31  ;;  %v1074_v7 = vperm.slane %v1419_v6, 6 }
 0x432   :  { %v995_v33 = vmax.f32 %v991_v32, 0.0 }
 0x434   :  { %1408 = vmatmul.msk.f32.gmra.mxu3 %vm405_vm3, %v995_v33 }
 0x49f   :  { %v1030_v34 = vpop.f32.mrf.mxu3 }
 0x4a0   :  { %v1031_v44 = vadd.f32 %v1030_v34, %v1000_v37 }
 0x4a2   :  { %v1042_v47 = vmax.f32 %v1031_v44, 0.0 }
 0x4a7   :  { %v1033_v35 = vpop.f32.mrf.mxu3 }
 0x4a8   :  { %v1034_v42 = vadd.f32 %v1033_v35, %v1000_v37  ;;  %v1221_v35 = vperm.slane %v1419_v6, 7 }
 0x4aa   :  { %v1043_v46 = vmax.f32 %v1034_v42, 0.0 }
 0x4af   :  { %v1036_v36 = vpop.f32.mrf.mxu3 }
 0x4b0   :  { %v1037_v40 = vadd.f32 %v1036_v36, %v1000_v37 }
 0x4b2   :  { %v1044_v45 = vmax.f32 %v1037_v40, 0.0 }
 0x4b7   :  { %v1039_v38 = vpop.f32.mrf.mxu3 }
 0x4b8   :  { %v1040_v41 = vadd.f32 %v1039_v38, %v1000_v37 }
 0x4ba   :  { %v1045_v43 = vmax.f32 %v1040_v41, 0.0 }
 0x4bc   :  { %1062 = vmatpush.msrb.mxu2 %v1045_v43 }
 0x4be   :  { %1063 = vmatpush.msrb.mxu2 %v1044_v45 }
 0x4c0   :  { %1064 = vmatpush.msrb.mxu2 %v1043_v46 }
 0x4c2   :  { %1065 = vmatpush.msrb.mxu2 %v1042_v47 }
 0x4c3   :  { %1409 = vmatmul.msk.f32.vlgmr.msrb.gmra.mxu2 %vm405_vm3, %v1046_v48 }
 0x4c4   :  { %1090 = vmatpush.msra.mxu2 %v1073_v49 }
 0x4c6   :  { %1091 = vmatpush.msra.mxu2 %v1072_v50 }
 0x4c8   :  { %1092 = vmatpush.msra.mxu2 %v1071_v19 }
 0x4ca   :  { %1093 = vmatpush.msra.mxu2 %v1070_v51 }
 0x4cc   :  { %1161 = vmatpush.msrb.mxu2 %v1112_v55 }
 0x4ce   :  { %1162 = vmatpush.msrb.mxu2 %v1108_v56 }
 0x4d0   :  { %1163 = vmatpush.msrb.mxu2 %v1104_v58 }
 0x4d2   :  { %1164 = vmatpush.msrb.mxu2 %v1100_v60 }
 0x546   :  { %v1067_v54 = vpop.f32.mrf.mxu2 }
 0x547   :  { %1410 = vmatmul.msk.f32.vlgmr.msra.gmra.mxu2 %vm405_vm3, %v1067_v54 }
 0x548   :  { %1201 = vmatpush.msra.mxu2 %v1114_v0 }
 0x54a   :  { %1202 = vmatpush.msra.mxu2 %v1110_v2 }
 0x54c   :  { %1203 = vmatpush.msra.mxu2 %v1106_v4 }
 0x54e   :  { %1204 = vmatpush.msra.mxu2 %v1102_v39 }
 0x5ca   :  { %v1095_v8 = vpop.f32.mrf.mxu2 }
 0x5cb   :  { %v1096_v9 = vadd.f32 %v1095_v8, %v1074_v7 }
 0x5cd   :  { %v1098_v10 = vmax.f32 %v1096_v9, 0.0 }
 0x5cf   :  { %1412 = vmatmul.msk.f32.vlgmr.msra.gmra.mxu3 %vm405_vm3, %v1098_v10  ;;  %1413 = vmatmul.msk.f32.vlgmr.msrb.gmra.mxu2 %vm405_vm3, %v1098_v10 }
 0x5d0   :  { %1236 = vmatpush.xpose.msra.mxu3 %v1217_v11  ;;  %1256 = vmatpush.xpose.msrb.mxu2 %v1218_v12 }
 0x5d4   :  { %1237 = vmatpush.xpose.msra.mxu3 %v1213_v13  ;;  %1257 = vmatpush.xpose.msrb.mxu2 %v1214_v14 }
 0x5d7   :  { %1414 = vmatmul.msk.f32.vlgmr.msrb.gmra.mxu3 %vm405_vm3, %v1098_v10  ;;  %1415 = vmatmul.msk.f32.vlgmr.msra.gmra.mxu2 %vm405_vm3, %v1098_v10 }
 0x5d8   :  { %1276 = vmatpush.xpose.msrb.mxu3 %v1219_v15 }
 0x5dc   :  { %1277 = vmatpush.xpose.msrb.mxu3 %v1215_v16 }
 0x652   :  { %v1146_v21 = vpop.f32.mrf.mxu3  ;;  %v1166_v22 = vpop.f32.mrf.mxu2 }
 0x653   :  { %v1147_v23 = vadd.f32 %v1146_v21, %v1118_v18  ;;  %v1167_v24 = vadd.f32 %v1166_v22, %v1119_v20 }
 0x655   :  { %v1209_v25 = vmax.f32 %v1147_v23, 0.0  ;;  %v1210_v26 = vmax.f32 %v1167_v24, 0.0 }
 0x657   :  { %1238 = vmatmul.f32.vlgmr.msra.gmra.mxu3 %v1209_v25  ;;  %1258 = vmatmul.f32.vlgmr.msrb.gmra.mxu2 %v1210_v26 }
 0x65a   :  { %v1186_v29 = vpop.f32.mrf.mxu3  ;;  %v1206_v30 = vpop.f32.mrf.mxu2 }
 0x65b   :  { %v1187_v31 = vadd.f32 %v1186_v29, %v1120_v27  ;;  %v1207_v32 = vadd.f32 %v1206_v30, %v1121_v28 }
 0x65d   :  { %v1211_v33 = vmax.f32 %v1187_v31, 0.0  ;;  %v1212_v34 = vmax.f32 %v1207_v32, 0.0 }
 0x65f   :  { %1278 = vmatmul.f32.vlgmr.msrb.gmra.mxu3 %v1211_v33  ;;  %1298 = vmatmul.f32.vlgmr.msra.gmra.mxu0 %v1212_v34 }
 0x6da   :  { %v1239_v36 = vpop.f32.mrf.mxu3  ;;  %v1259_v38 = vpop.f32.mrf.mxu2 }
 0x6db   :  { %v1240_v37 = vadd.f32 %v1239_v36, %v1221_v35 }
 0x6dc   :  { %v1299_v43 = vpop.f32.mrf.mxu0 }
 0x6dd   :  { %v1260_v40 = vadd.f32 %v1259_v38, %v1240_v37 }
 0x6e2   :  { %v1279_v41 = vpop.f32.mrf.mxu3 }
 0x6e3   :  { %v1280_v42 = vadd.f32 %v1279_v41, %v1260_v40 }
 0x6e5   :  { %v1300_v44 = vadd.f32 %v1299_v43, %v1280_v42 }
 0x6e7   :  { %1302 = vst.msk [vmem:[%s1812_s3] sm:$0xff] %vm186_vm2, %v1300_v44 }
 0x6e8   :  { %1307 = vsyncpa [#allocation3], 1 }

</bundles_post_ra>
